<compile_context>
chip_gen: v5e
topology: v5e:2x2
jax: 0.10.0
libtpu: 0.0.40
codegen_flags: <defaults>
</compile_context>

<pallas_src>
import jax
import jax.numpy as jnp
from jax.experimental import pallas as pl
from jax.experimental.pallas import tpu as pltpu

_SUBLANES = 8  # second-to-last tile dim maps to sublanes


def _round_up(x, m):
    return (x + m - 1) // m * m


def logreg_kernel(x_ref, wt_ref, b_ref, o_ref):
    # x_ref:  (tb, d_in)     VMEM, pipelined over the batch grid (bf16 or f32)
    # wt_ref: (d_in, d_out)  VMEM, resident across grid iterations
    # b_ref:  (1, d_out)     VMEM, resident, f32
    # o_ref:  (tb, d_out)    VMEM, pipelined, f32
    z = jnp.dot(x_ref[...], wt_ref[...], preferred_element_type=jnp.float32)
    z = z + b_ref[...]  # broadcast bias over batch rows (f32)
    # sigmoid(z) = 1 / (1 + exp(-z)); exact reciprocal (approx buys nothing on
    # a memory-bound kernel and costs accuracy).
    o_ref[...] = (1.0 / (1.0 + jnp.exp(-z))).astype(o_ref.dtype)


def prepare_params(weight, bias, param_dtype=jnp.bfloat16):
    """Transpose PyTorch-layout (out, in) weight once at parameter-load time.

    Casting to bf16 halves HBM weight traffic and the VMEM-resident footprint;
    the bias stays f32 because it is added after the f32 MXU accumulate.
    """
    wt = jnp.asarray(weight).T.astype(param_dtype)        # (d_in, d_out)
    b = jnp.asarray(bias, jnp.float32).reshape(1, -1)     # (1, d_out)
    return wt, b


def _vmem_budget_and_limit():
    """Per-generation (budget, vmem_limit_bytes)."""
    try:
        cap = pltpu.get_tpu_info().vmem_capacity_bytes
    except Exception:
        cap = None
    if cap is not None and cap >= 128 * 1024 * 1024:
        # v5e / v6e: 128 MiB physical VMEM -> use the headroom.
        return 64 * 1024 * 1024, 100 * 1024 * 1024
    # v7x (64 MiB per TC) or unknown backend: stay conservative.
    return 24 * 1024 * 1024, 32 * 1024 * 1024


def _pick_batch_tile(b8, d_in, d_out, x_itemsize, w_itemsize, budget_bytes,
                     tb_cap=8192):
    """Largest batch tile (multiple of 8, capped at tb_cap) that fits VMEM.

    Accounting is conservative: weight/bias counted at 2x (Pallas
    double-buffers inputs by default even with a constant index_map), x and
    out tiles at 2x (pipeline double buffering), plus the f32 z intermediate.
    """
    resident = 2 * (w_itemsize * d_in * d_out + 4 * d_out)
    if resident > budget_bytes:
        # TODO(synk): add K/N tiling of the weight for feature dims too large
        # to keep the whole weight VMEM-resident.
        raise ValueError("LogReg weight does not fit the VMEM budget; "
                         "K/N tiling of the weight is required.")
    per_row = 2 * (x_itemsize * d_in) + 2 * (4 * d_out) + 4 * d_out
    tb = tb_cap
    while tb > _SUBLANES and resident + tb * per_row > budget_bytes:
        tb //= 2
    tb = max(_SUBLANES, tb)
    return min(tb, b8)


def logreg_forward(x, wt, b):
    """x: (B, d_in); wt: (d_in, d_out) pre-transposed (bf16) weight;
    b: (1, d_out) f32 bias.  Returns sigmoid(x @ wt + b) as (B, d_out) f32."""
    B, d_in = x.shape
    d_in_w, d_out = wt.shape
    assert d_in == d_in_w, (d_in, d_in_w)

    # bf16 input cast: halves HBM read traffic on a memory-bound kernel.
    x = x.astype(wt.dtype)

    # Pad the batch only to a multiple of 8 (sublanes); zero-fill keeps the
    # padded rows finite, and they are sliced off below.
    b8 = _round_up(B, _SUBLANES)
    if b8 != B:
        x = jnp.pad(x, ((0, b8 - B), (0, 0)))

    budget, vmem_limit = _vmem_budget_and_limit()
    tb = _pick_batch_tile(b8, d_in, d_out, x.dtype.itemsize, wt.dtype.itemsize,
                          budget)

    out = pl.pallas_call(
        logreg_kernel,
        out_shape=jax.ShapeDtypeStruct((b8, d_out), jnp.float32),
        grid=(pl.cdiv(b8, tb),),
        in_specs=[
            pl.BlockSpec((tb, d_in), lambda i: (i, 0)),     # pipelined x tiles
            pl.BlockSpec((d_in, d_out), lambda i: (0, 0)),  # weight, VMEM-resident
            pl.BlockSpec((1, d_out), lambda i: (0, 0)),     # bias, VMEM-resident
        ],
        out_specs=pl.BlockSpec((tb, d_out), lambda i: (i, 0)),
        compiler_params=pltpu.CompilerParams(
            dimension_semantics=("parallel",),  # batch rows independent
            vmem_limit_bytes=vmem_limit,
        ),
    )(x, wt, b)

    return out if b8 == B else out[:B]


if __name__ == "__main__":
    # Small shapes consistent with the module: LogReg(input_dim=32, output_dim=8)
    B, D_in, D_out = 8, 32, 8

    key = jax.random.PRNGKey(0)
    kx, kw, kb = jax.random.split(key, 3)

    # Deterministic init mimicking nn.Linear default: U(-1/sqrt(in), 1/sqrt(in))
    bound = 1.0 / (D_in ** 0.5)
    weight = jax.random.uniform(kw, (D_out, D_in), jnp.float32, -bound, bound)
    bias = jax.random.uniform(kb, (D_out,), jnp.float32, -bound, bound)
    x = jax.random.normal(kx, (B, D_in), jnp.float32)

    wt, b = prepare_params(weight, bias, param_dtype=jnp.bfloat16)
    fwd = jax.jit(logreg_forward)
    out = jax.block_until_ready(fwd(x, wt, b))

    # Reference with the same bf16 input/weight quantization (the kernel keeps
    # the matmul accumulate, bias add and sigmoid in f32).
    x_ref = x.astype(jnp.bfloat16).astype(jnp.float32)
    w_ref = weight.astype(jnp.bfloat16).astype(jnp.float32)
    z_ref = jnp.dot(x_ref, w_ref.T, precision=jax.lax.Precision.HIGHEST) + bias
    ref = jax.nn.sigmoid(z_ref)

    assert out.shape == (B, D_out)
    assert out.dtype == jnp.float32
    err = float(jnp.max(jnp.abs(out - ref)))
    assert jnp.allclose(out, ref, atol=1e-4, rtol=1e-4), err

    print("KERNEL_OK")
</pallas_src>

<mosaic_0001>
module attributes {stable_mosaic.version = 11 : i64} {
  func.func @logreg_kernel(%arg0: i32, %arg1: memref<8x32xbf16, #tpu.memory_space<vmem>>, %arg2: memref<32x8xbf16, #tpu.memory_space<vmem>>, %arg3: memref<1x8xf32, #tpu.memory_space<vmem>>, %arg4: memref<8x8xf32, #tpu.memory_space<vmem>>) attributes {dimension_semantics = [#tpu.dimension_semantics<parallel>], iteration_bounds = array<i64: 1>, scalar_prefetch = 0 : i64, scratch_operands = 0 : i64, tpu.core_type = #tpu.core_type<tc>, window_params = [{transform_indices = @transform_0, window_bounds = array<i64: 8, 32>}, {pipeline_mode = #tpu.pipeline_mode<synchronous>, transform_indices = @transform_1, window_bounds = array<i64: 32, 8>}, {pipeline_mode = #tpu.pipeline_mode<synchronous>, transform_indices = @transform_2, window_bounds = array<i64: 1, 8>}, {transform_indices = @transform_3, window_bounds = array<i64: 8, 8>}]} {
    %c0 = arith.constant 0 : index
    %c0_0 = arith.constant 0 : index
    %0 = vector.load %arg1[%c0, %c0_0] : memref<8x32xbf16, #tpu.memory_space<vmem>>, vector<8x32xbf16>
    %c0_1 = arith.constant 0 : index
    %c0_2 = arith.constant 0 : index
    %1 = vector.load %arg2[%c0_1, %c0_2] : memref<32x8xbf16, #tpu.memory_space<vmem>>, vector<32x8xbf16>
    %cst = arith.constant dense<0.000000e+00> : vector<8x8xf32>
    %2 = tpu.matmul %0, %1, %cst {dimension_numbers = #tpu.dot_dimension_numbers<[1], [0], [0], [1], [0, 0, 1, 1], [], []>} : vector<8x32xbf16>, vector<32x8xbf16>, vector<8x8xf32> -> vector<8x8xf32>
    %c0_3 = arith.constant 0 : index
    %c0_4 = arith.constant 0 : index
    %3 = vector.load %arg3[%c0_3, %c0_4] : memref<1x8xf32, #tpu.memory_space<vmem>>, vector<1x8xf32>
    %4 = vector.broadcast %3 : vector<1x8xf32> to vector<8x8xf32>
    %5 = arith.addf %2, %4 : vector<8x8xf32>
    %cst_5 = arith.constant 0.000000e+00 : f32
    %6 = vector.broadcast %cst_5 : f32 to vector<8x8xf32>
    %7 = arith.subf %6, %5 : vector<8x8xf32>
    %8 = math.exp %7 : vector<8x8xf32>
    %cst_6 = arith.constant 1.000000e+00 : f32
    %9 = vector.broadcast %cst_6 : f32 to vector<8x8xf32>
    %10 = arith.addf %9, %8 : vector<8x8xf32>
    %cst_7 = arith.constant 1.000000e+00 : f32
    %11 = vector.broadcast %cst_7 : f32 to vector<8x8xf32>
    %12 = arith.divf %11, %10 : vector<8x8xf32>
    %c0_8 = arith.constant 0 : index
    %c0_9 = arith.constant 0 : index
    %13 = vector.load %arg4[%c0_8, %c0_9] : memref<8x8xf32, #tpu.memory_space<vmem>>, vector<8x8xf32>
    tpu.vector_store %arg4[%c0_8, %c0_9], %12 {strides = array<i32>} : memref<8x8xf32, #tpu.memory_space<vmem>>, vector<8x8xf32>,
    return
  }
  func.func @transform_0(%arg0: i32) -> (i32, i32) {
    %c0_i32 = arith.constant 0 : i32
    %c0_i32_0 = arith.constant 0 : i32
    return %arg0, %c0_i32 : i32, i32
  }
  func.func @transform_1(%arg0: i32) -> (i32, i32) {
    %c0_i32 = arith.constant 0 : i32
    %c0_i32_0 = arith.constant 0 : i32
    %c0_i32_1 = arith.constant 0 : i32
    return %c0_i32, %c0_i32_0 : i32, i32
  }
  func.func @transform_2(%arg0: i32) -> (i32, i32) {
    %c0_i32 = arith.constant 0 : i32
    %c0_i32_0 = arith.constant 0 : i32
    %c0_i32_1 = arith.constant 0 : i32
    return %c0_i32, %c0_i32_0 : i32, i32
  }
  func.func @transform_3(%arg0: i32) -> (i32, i32) {
    %c0_i32 = arith.constant 0 : i32
    %c0_i32_0 = arith.constant 0 : i32
    return %arg0, %c0_i32 : i32, i32
  }
}

</mosaic_0001>

<bundles_post_ra>
// kernel: logreg_forward.1
= control target key start
LH: loop header
LB: loop body
LE: loop exit
PB: predicated region body
PF: predicated region fallthrough
CT: control target
= control target key end

     0   :  { %s170_s0 = inlined_call_operand.vmem [shape: bf16[8,32], index: 0, kind: input, shape index: {}]   ;;  %s171_s1 = inlined_call_operand.vmem [shape: bf16[32,8], index: 1, kind: input, shape index: {}]   ;;  %s172_s2 = inlined_call_operand.vmem [shape: f32[1,8], index: 2, kind: input, shape index: {}]   ;;  %s173_s3 = inlined_call_operand.hbm [shape: f32[8,8], index: 3, kind: output, shape index: {}]  }
   0x1   :  { %v101_v0 = vld [vmem:[%s171_s1 + $0x8] sm:$0xff] }
   0x2   :  { %8 = vsyncpa [#allocation3], 0  ;;  %47 = vmatpush.bf16.msra.mxu0 %v101_v0  ;;  %v100_v1 = vld [vmem:[%s171_s1] sm:$0xff]  ;;  %vm37_vm0 = vcmask 261120   ;;  %s82_s21 = sshll.u32 %s173_s3, 4  ;;  %vm73_vm4 = vcmask 64512   ;;  %s83_s21 = int_to_ptr.hbm [resolvable:$true] %s82_s21 }
   0x3   :  { %v16_v2 = vld [vmem:[%s170_s0] sm:$0xf]  ;;  %s134_s0 = smov [#allocation2]  }
   0x4   :  { %v103_v3 = vld [vmem:[%s172_s2] ss:$0 sm:$0xff]  ;;  %s80_s1 = sshll.u32 %s134_s0, 4  ;;  %s81_s1 = int_to_ptr.vmem [resolvable:$true] %s80_s1 }
   0x6   :  { %48 = vmatpush.bf16.msra.mxu0 %v100_v1 }
   0x9   :  { %99 = vmatmul.msk.bf16.vlgmr.msra.gmra.mxu0 %vm37_vm0, %v16_v2 }
  0x86   :  { %v50_v4 = vpop.f32.mrf.mxu0 }
  0x87   :  { %v51_v5 = vadd.f32 %v103_v3, %v50_v4 }
  0x89   :  { %v54_v6 = vsub.f32 0.0, %v51_v5 }
  0x8b   :  { %v55_v7 = vmul.f32 1.442695, %v54_v6 }
  0x8d   :  { %104 = vpow2.f32 %v55_v7 }
  0x8e   :  { %v52_v8 = vpop.f32.mrf.mxu0 }
  0x93   :  { %v105_v9 = vpop.eup %104 }
  0x94   :  { %v57_v10 = vadd.f32 1.0, %v105_v9 }
  0x96   :  { %106 = vrcp.f32 %v57_v10  ;;  %v69_v14 = vand.u32 2147483648, %v57_v10  ;;  %v67_v16 = vand.u32 2147483647, %v57_v10  ;;  %vm63_vm2 = vweird.f32 %v57_v10 }
  0x98   :  { %v70_v18 = vor.u32 1.1754944e-38, %v69_v14  ;;  %vm68_vm5 = vcmp.eq.f32.partialorder %v67_v16, 8.507059e+37 }
  0x9c   :  { %v107_v11 = vpop.eup %106 }
  0x9d   :  { %v59_v12 = vmul.f32 %v107_v11, %v57_v10  ;;  %vm64_vm1 = vweird.f32 %v107_v11 }
  0x9e   :  { %vm65_vm3 = vmor %vm63_vm2, %vm64_vm1 }
  0x9f   :  { %v60_v13 = vsub.f32 1.0, %v59_v12 }
  0xa1   :  { %v61_v15 = vmul.f32 %v107_v11, %v60_v13 }
  0xa3   :  { %v62_v17 = vadd.f32 %v107_v11, %v61_v15 }
  0xa5   :  { %v66_v19 = vsel %vm65_vm3, %v107_v11, %v62_v17 }
  0xa6   :  { %v71_v20 = vsel %vm68_vm5, %v70_v18, %v66_v19 }
  0xa7   :  { %74 = vst.msk [vmem:[#allocation2] sm:$0xff] %vm73_vm4, %v71_v20 }
  0xa8   :  { %85 = dma.vmem_to_hbm [thread:$0]  %s81_s1, 128, %s83_s21, [#allocation3]  }
  0xa9   :  { %132 = dma.done.wait [#allocation3], 128  }
  0xaa   :  { %133 = vsyncadd [#allocation3], 4294967168 }
  0xab   :  { %90 = vsyncpa [#allocation3], 1 }

</bundles_post_ra>
